<compile_context>
chip_gen: v7x
topology: tpu7x:2x2x1
jax: 0.10.0
libtpu: 0.0.40
codegen_flags: <defaults>
</compile_context>

<pallas_src>
import math

import jax
import jax.numpy as jnp
from jax.experimental import pallas as pl
from jax.experimental.pallas import tpu as pltpu

LANE = 128


def _round_up(n, m):
    return -(-n // m) * m


def _mlp_kernel(x_ref, w1_ref, b1_ref, w2_ref, b2_ref, o_ref):
    # fc1: x @ W1  (bf16 operands, f32 accumulation on the MXU)
    x = x_ref[...].astype(jnp.bfloat16)
    h = jnp.dot(x, w1_ref[...], preferred_element_type=jnp.float32)
    # bias + ReLU in f32 on the VPU; h never leaves VMEM/vregs.
    h = jnp.maximum(h + b1_ref[...], 0.0)
    # fc2: h @ W2 + b2  (output is only num_classes lanes wide -> smallest
    # possible HBM write; masked vst is cheap vs. the saved bandwidth)
    out = jnp.dot(h.astype(jnp.bfloat16), w2_ref[...],
                  preferred_element_type=jnp.float32)
    out = out + b2_ref[...]
    o_ref[...] = out.astype(o_ref.dtype)


def prepare_params(w1, b1, w2, b2, *, compute_dtype=jnp.bfloat16):
    """One-time parameter preparation (do NOT call per forward pass).

    w1: [hidden, input]   (PyTorch nn.Linear layout) -> [input, hidden_pad] bf16
    w2: [classes, hidden]                            -> [hidden_pad, classes] bf16
    hidden is zero-padded to a multiple of 128 lanes; padded b1 entries are 0,
    padded w2 rows are 0, so results are numerically identical.
    """
    hidden, in_size = w1.shape
    num_classes = w2.shape[0]
    hidden_pad = max(LANE, _round_up(hidden, LANE))

    w1_t = jnp.zeros((in_size, hidden_pad), compute_dtype)
    w1_t = w1_t.at[:, :hidden].set(jnp.asarray(w1.T, dtype=compute_dtype))
    b1_2d = jnp.zeros((1, hidden_pad), jnp.float32)
    b1_2d = b1_2d.at[0, :hidden].set(jnp.asarray(b1, dtype=jnp.float32))

    w2_t = jnp.zeros((hidden_pad, num_classes), compute_dtype)
    w2_t = w2_t.at[:hidden, :].set(jnp.asarray(w2.T, dtype=compute_dtype))
    b2_2d = jnp.asarray(b2, dtype=jnp.float32).reshape(1, num_classes)

    return dict(w1_t=w1_t, b1=b1_2d, w2_t=w2_t, b2=b2_2d,
                num_classes=num_classes, hidden=hidden)


def _pick_row_tile(B, row_tile):
    """Row tile: multiple of 8 sublanes, big (mem-bound kernel), and >= 2 grid
    tiles for large batches so v7x's 2 TensorCores both get work."""
    row_tile = max(8, _round_up(row_tile, 8))
    if B <= 16:
        return B                       # tiny batch: one full-dim tile
    if B <= row_tile:
        half = (B + 1) // 2            # split in two for megacore
        return min(row_tile, _round_up(half, 8))
    return row_tile


def modal_select_forward(x, params, *, row_tile=512, out_dtype=None):
    """Fused Linear -> ReLU -> Linear.   x: [B, input_size] -> [B, num_classes]."""
    w1_t, b1_2d = params["w1_t"], params["b1"]
    w2_t, b2_2d = params["w2_t"], params["b2"]
    num_classes = params["num_classes"]

    B, in_size = x.shape
    hidden_pad = w1_t.shape[1]
    out_dtype = x.dtype if out_dtype is None else jnp.dtype(out_dtype)

    tm = _pick_row_tile(B, row_tile)
    n_tiles = pl.cdiv(B, tm)           # ragged last tile: Pallas masks the store

    flops = 2 * B * (in_size * hidden_pad + hidden_pad * num_classes)
    bytes_accessed = (
        B * in_size * x.dtype.itemsize
        + B * num_classes * jnp.dtype(out_dtype).itemsize
        + (w1_t.size + w2_t.size) * 2          # bf16 weights
        + (b1_2d.size + b2_2d.size) * 4)       # f32 biases

    return pl.pallas_call(
        _mlp_kernel,
        out_shape=jax.ShapeDtypeStruct((B, num_classes), out_dtype),
        grid=(n_tiles,),
        in_specs=[
            pl.BlockSpec((tm, in_size), lambda i: (i, 0)),          # x: row tiles
            pl.BlockSpec((in_size, hidden_pad), lambda i: (0, 0)),  # w1: resident
            pl.BlockSpec((1, hidden_pad), lambda i: (0, 0)),        # b1: resident
            pl.BlockSpec((hidden_pad, num_classes), lambda i: (0, 0)),  # w2
            pl.BlockSpec((1, num_classes), lambda i: (0, 0)),       # b2
        ],
        out_specs=pl.BlockSpec((tm, num_classes), lambda i: (i, 0)),
        compiler_params=pltpu.CompilerParams(
            dimension_semantics=("parallel",)),
        cost_estimate=pl.CostEstimate(flops=flops, transcendentals=0,
                                      bytes_accessed=bytes_accessed),
    )(x, w1_t, b1_2d, w2_t, b2_2d)


def init_linear_params(key, out_features, in_features, dtype=jnp.float32):
    """Deterministic init mimicking PyTorch nn.Linear defaults
    (uniform(-1/sqrt(fan_in), 1/sqrt(fan_in)))."""
    k_w, k_b = jax.random.split(key)
    bound = 1.0 / math.sqrt(in_features)
    w = jax.random.uniform(k_w, (out_features, in_features), dtype,
                           minval=-bound, maxval=bound)
    b = jax.random.uniform(k_b, (out_features,), dtype,
                           minval=-bound, maxval=bound)
    return w, b


if __name__ == "__main__":
    # Small shapes consistent with the module's forward: x is [batch, input_size].
    batch, input_size, hidden_size, num_classes = 4, 32, 64, 16

    key = jax.random.PRNGKey(0)
    k_x, k_fc1, k_fc2 = jax.random.split(key, 3)

    x = jax.random.normal(k_x, (batch, input_size), jnp.float32)
    w1, b1 = init_linear_params(k_fc1, hidden_size, input_size)
    w2, b2 = init_linear_params(k_fc2, num_classes, hidden_size)

    params = prepare_params(w1, b1, w2, b2)          # one-time layout work
    out = modal_select_forward(x, params)
    out = jax.block_until_ready(out)

    # Pure-f32 reference; bf16 MXU operands => loose tolerance (~1e-2 level).
    ref = jnp.maximum(x @ w1.T + b1, 0.0) @ w2.T + b2
    assert out.shape == (batch, num_classes)
    assert jnp.allclose(out, ref, atol=3e-2, rtol=3e-2), \
        float(jnp.max(jnp.abs(out - ref)))

    print("KERNEL_OK")
</pallas_src>

<mosaic_0001>
module attributes {stable_mosaic.version = 11 : i64} {
  func.func @_mlp_kernel(%arg0: i32, %arg1: memref<4x32xf32, #tpu.memory_space<vmem>>, %arg2: memref<32x128xbf16, #tpu.memory_space<vmem>>, %arg3: memref<1x128xf32, #tpu.memory_space<vmem>>, %arg4: memref<128x16xbf16, #tpu.memory_space<vmem>>, %arg5: memref<1x16xf32, #tpu.memory_space<vmem>>, %arg6: memref<4x16xf32, #tpu.memory_space<vmem>>) attributes {dimension_semantics = [#tpu.dimension_semantics<parallel>], iteration_bounds = array<i64: 1>, scalar_prefetch = 0 : i64, scratch_operands = 0 : i64, tpu.core_type = #tpu.core_type<tc>, window_params = [{transform_indices = @transform_0, window_bounds = array<i64: 4, 32>}, {pipeline_mode = #tpu.pipeline_mode<synchronous>, transform_indices = @transform_1, window_bounds = array<i64: 32, 128>}, {pipeline_mode = #tpu.pipeline_mode<synchronous>, transform_indices = @transform_2, window_bounds = array<i64: 1, 128>}, {pipeline_mode = #tpu.pipeline_mode<synchronous>, transform_indices = @transform_3, window_bounds = array<i64: 128, 16>}, {pipeline_mode = #tpu.pipeline_mode<synchronous>, transform_indices = @transform_4, window_bounds = array<i64: 1, 16>}, {transform_indices = @transform_5, window_bounds = array<i64: 4, 16>}]} {
    %c0 = arith.constant 0 : index
    %c0_0 = arith.constant 0 : index
    %0 = vector.load %arg1[%c0, %c0_0] : memref<4x32xf32, #tpu.memory_space<vmem>>, vector<4x32xf32>
    %1 = arith.truncf %0 : vector<4x32xf32> to vector<4x32xbf16>
    %c0_1 = arith.constant 0 : index
    %c0_2 = arith.constant 0 : index
    %2 = vector.load %arg2[%c0_1, %c0_2] : memref<32x128xbf16, #tpu.memory_space<vmem>>, vector<32x128xbf16>
    %cst = arith.constant dense<0.000000e+00> : vector<4x128xf32>
    %3 = tpu.matmul %1, %2, %cst {dimension_numbers = #tpu.dot_dimension_numbers<[1], [0], [0], [1], [0, 0, 1, 1], [], []>} : vector<4x32xbf16>, vector<32x128xbf16>, vector<4x128xf32> -> vector<4x128xf32>
    %c0_3 = arith.constant 0 : index
    %c0_4 = arith.constant 0 : index
    %4 = vector.load %arg3[%c0_3, %c0_4] : memref<1x128xf32, #tpu.memory_space<vmem>>, vector<1x128xf32>
    %5 = vector.broadcast %4 : vector<1x128xf32> to vector<4x128xf32>
    %6 = arith.addf %3, %5 : vector<4x128xf32>
    %cst_5 = arith.constant 0.000000e+00 : f32
    %7 = vector.broadcast %cst_5 : f32 to vector<4x128xf32>
    %8 = arith.maximumf %6, %7 : vector<4x128xf32>
    %9 = arith.truncf %8 : vector<4x128xf32> to vector<4x128xbf16>
    %c0_6 = arith.constant 0 : index
    %c0_7 = arith.constant 0 : index
    %10 = vector.load %arg4[%c0_6, %c0_7] : memref<128x16xbf16, #tpu.memory_space<vmem>>, vector<128x16xbf16>
    %cst_8 = arith.constant dense<0.000000e+00> : vector<4x16xf32>
    %11 = tpu.matmul %9, %10, %cst_8 {dimension_numbers = #tpu.dot_dimension_numbers<[1], [0], [0], [1], [0, 0, 1, 1], [], []>} : vector<4x128xbf16>, vector<128x16xbf16>, vector<4x16xf32> -> vector<4x16xf32>
    %c0_9 = arith.constant 0 : index
    %c0_10 = arith.constant 0 : index
    %12 = vector.load %arg5[%c0_9, %c0_10] : memref<1x16xf32, #tpu.memory_space<vmem>>, vector<1x16xf32>
    %13 = vector.broadcast %12 : vector<1x16xf32> to vector<4x16xf32>
    %14 = arith.addf %11, %13 : vector<4x16xf32>
    %c0_11 = arith.constant 0 : index
    %c0_12 = arith.constant 0 : index
    %15 = vector.load %arg6[%c0_11, %c0_12] : memref<4x16xf32, #tpu.memory_space<vmem>>, vector<4x16xf32>
    tpu.vector_store %arg6[%c0_11, %c0_12], %14 {strides = array<i32>} : memref<4x16xf32, #tpu.memory_space<vmem>>, vector<4x16xf32>,
    return
  }
  func.func @transform_0(%arg0: i32) -> (i32, i32) {
    %c0_i32 = arith.constant 0 : i32
    %c0_i32_0 = arith.constant 0 : i32
    return %arg0, %c0_i32 : i32, i32
  }
  func.func @transform_1(%arg0: i32) -> (i32, i32) {
    %c0_i32 = arith.constant 0 : i32
    %c0_i32_0 = arith.constant 0 : i32
    %c0_i32_1 = arith.constant 0 : i32
    return %c0_i32, %c0_i32_0 : i32, i32
  }
  func.func @transform_2(%arg0: i32) -> (i32, i32) {
    %c0_i32 = arith.constant 0 : i32
    %c0_i32_0 = arith.constant 0 : i32
    %c0_i32_1 = arith.constant 0 : i32
    return %c0_i32, %c0_i32_0 : i32, i32
  }
  func.func @transform_3(%arg0: i32) -> (i32, i32) {
    %c0_i32 = arith.constant 0 : i32
    %c0_i32_0 = arith.constant 0 : i32
    %c0_i32_1 = arith.constant 0 : i32
    return %c0_i32, %c0_i32_0 : i32, i32
  }
  func.func @transform_4(%arg0: i32) -> (i32, i32) {
    %c0_i32 = arith.constant 0 : i32
    %c0_i32_0 = arith.constant 0 : i32
    %c0_i32_1 = arith.constant 0 : i32
    return %c0_i32, %c0_i32_0 : i32, i32
  }
  func.func @transform_5(%arg0: i32) -> (i32, i32) {
    %c0_i32 = arith.constant 0 : i32
    %c0_i32_0 = arith.constant 0 : i32
    return %arg0, %c0_i32 : i32, i32
  }
}

</mosaic_0001>

<bundles_post_ra>
// kernel: tpu_custom_call.1
= control target key start
LH: loop header
LB: loop body
LE: loop exit
PB: predicated region body
PF: predicated region fallthrough
CT: control target
= control target key end

     0   :  { %v310_v1 = vmov 0.0   ;;  %vm311_vm0 = vmmov 0   ;;  %vm47_vm1 = vcmask 261120   ;;  %s394_s0 = inlined_call_operand.vmem [shape: f32[4,32], index: 0, kind: input, shape index: {}]   ;;  %s395_s1 = inlined_call_operand.vmem [shape: bf16[32,128], index: 1, kind: input, shape index: {}]   ;;  %s396_s2 = inlined_call_operand.vmem [shape: f32[1,128], index: 2, kind: input, shape index: {}]   ;;  %s397_s3 = inlined_call_operand.vmem [shape: bf16[128,16], index: 3, kind: input, shape index: {}]   ;;  %s398_s4 = inlined_call_operand.vmem [shape: f32[1,16], index: 4, kind: input, shape index: {}]   ;;  %s399_s5 = inlined_call_operand.hbm [shape: f32[4,16], index: 5, kind: output, shape index: {}]  }
   0x1   :  { %v276_v0 = vld [vmem:[%s395_s1] sm:$0xff]   ;;  %245 = vmatprep.subr.bf16.mxu0 %v310_v1  ;;  %v277_v2 = vld [vmem:[%s395_s1 + $0x8] sm:$0xff]   ;;  %253 = vmatprep.subr.bf16.mxu1 %v310_v1  ;;  %v280_v7 = vld [vmem:[%s397_s3 + $0x10] sm:$0xff]  }
   0x2   :  { %246 = vmatpush3.bf16.msra.mxu0 %v276_v0  ;;  %249 = vmatprep.mubr.msk.bf16.mxu0 %vm311_vm0, %v310_v1  ;;  %v22_v3 = vld [vmem:[%s394_s0] sm:$0xf]  ;;  %v279_v5 = vld [vmem:[%s397_s3 + $0x8] sm:$0xff]  }
   0x3   :  { %v278_v4 = vld [vmem:[%s397_s3] sm:$0xff]   ;;  %247 = vmatprep.subr.bf16.mxu0 %v310_v1  ;;  %269 = vmatprep.mubr.msk.bf16.mxu1 %vm311_vm0, %v310_v1  ;;  %v23_v6 = vpack.c.bf16 %v22_v3, %v22_v3 }
   0x4   :  { %254 = vmatpush3.bf16.msra.mxu1 %v278_v4 }
   0x5   :  { %255 = vmatprep.subr.bf16.mxu1 %v310_v1 }
   0x6   :  { %248 = vmatpush3.bf16.msra.mxu0 %v277_v2 }
   0x8   :  { %256 = vmatpush3.bf16.msra.mxu1 %v279_v5 }
   0x9   :  { %250 = vmatmul.mubr.msk.bf16.vlgmr.msra.gmra.mrb[0].mxu0 %vm47_vm1, %v23_v6  ;;  %257 = vmatprep.subr.bf16.mxu1 %v310_v1 }
   0xa   :  { %10 = vsyncpa [#allocation3], 0  ;;  %v281_v8 = vld [vmem:[%s397_s3 + $0x18] sm:$0xff]   ;;  %v282_v9 = vld [vmem:[%s397_s3 + $0x20] sm:$0xff]   ;;  %s312_s17 = smov [#allocation2]   ;;  %vm204_vm2 = vcmask 125952  }
   0xb   :  { %v283_v10 = vld [vmem:[%s397_s3 + $0x28] sm:$0xff]   ;;  %v284_v11 = vld [vmem:[%s397_s3 + $0x30] sm:$0xff]   ;;  %v285_v12 = vld [vmem:[%s397_s3 + $0x38] sm:$0xff]   ;;  %s212_s18 = sshll.u32 %s312_s17, 4  ;;  %s213_s18 = int_to_ptr.vmem [resolvable:$true] %s212_s18 }
   0xc   :  { %258 = vmatpush3.bf16.msra.mxu1 %v280_v7  ;;  %v220_v13 = vld [vmem:[%s396_s2] ss:$0 sm:$0xff]  ;;  %s286_s2 = scalar_lea.vmem %s213_s18, 64  ;;  %p291_p1 = scmp.lt.s32.totalorder %s213_s18, %s213_s18 }
   0xd   :  { %259 = vmatprep.subr.bf16.mxu1 %v310_v1  ;;  %v224_v21 = vld [vmem:[%s398_s4] ss:$0 sm:$0xff]  ;;  %p287_p0 = scmp.ne.s32.totalorder %s213_s18, %s286_s2  ;;  %p292_p2 = scmp.lt.s32.totalorder %s286_s2, %s286_s2 }
   0xf   :  { %p293_p3 = por %p292_p2, %p291_p1 }
  0x10   :  { %260 = vmatpush3.bf16.msra.mxu1 %v281_v8 }
  0x11   :  { %261 = vmatprep.subr.bf16.mxu1 %v310_v1  ;;  %p294_p4 = pnand %p293_p3, %p287_p0 }
  0x14   :  { %262 = vmatpush3.bf16.msra.mxu1 %v282_v9 }
  0x15   :  { %263 = vmatprep.subr.bf16.mxu1 %v310_v1 }
  0x18   :  { %264 = vmatpush3.bf16.msra.mxu1 %v283_v10 }
  0x19   :  { %265 = vmatprep.subr.bf16.mxu1 %v310_v1 }
  0x1c   :  { %266 = vmatpush3.bf16.msra.mxu1 %v284_v11 }
  0x1d   :  { %267 = vmatprep.subr.bf16.mxu1 %v310_v1 }
  0x20   :  { %268 = vmatpush3.bf16.msra.mxu1 %v285_v12 }
  0xdc   :  { %v85_v14 = vpop.f32.mrb[0].mxu0 }
  0xdd   :  { %v86_v15 = vadd.f32 %v220_v13, %v85_v14  ;;  %v251_v16 = vpop.f32.mrb[1].mxu0 }
  0xde   :  { %v88_v17 = vpop.f32.mrb[2].mxu0 }
  0xdf   :  { %v91_v18 = vmax.f32 %v86_v15, 0.0  ;;  %v252_v19 = vpop.f32.mrb[3].mxu0 }
  0xe1   :  { %v92_v20 = vpack.c.bf16 %v91_v18, %v91_v18 }
  0xe3   :  { %270 = vmatmul.mubr.bf16.vlgmr.msra.gmra.mrb[0].mxu1 %v92_v20 }
 0x1b6   :  { %v198_v22 = vpop.f32.mrb[0].mxu1 }
 0x1b7   :  { %v199_v23 = vadd.f32 %v224_v21, %v198_v22  ;;  %v271_v24 = vpop.f32.mrb[1].mxu1 }
 0x1b8   :  { %v201_v25 = vpop.f32.mrb[2].mxu1 }
 0x1b9   :  { %v272_v26 = vpop.f32.mrb[3].mxu1  ;;  %205 = vst.msk [vmem:[#allocation2] sm:$0xf] %vm204_vm2, %v199_v23 }
 0x1ba   :  { %297 = shalt.err (!%p294_p4)
}
 0x1bb   :  { %s298_s4 = scalar_lea.hbm %s399_s5, 64 }
 0x1bc   :  { %p299_p5 = scmp.ne.s32.totalorder %s399_s5, %s298_s4  ;;  %p302_p6 = scmp.lt.u32.totalorder %s298_s4, %s399_s5 }
 0x1be   :  { %p304_p7 = pnand %p302_p6, %p299_p5 }
 0x1c0   :  { %307 = shalt.err (!%p304_p7)
}
 0x1c1   :  { %215 = dma.vmem_to_hbm [thread:$0]  %s213_s18, 64, %s399_s5, [#allocation3]  }
 0x1c2   :  { %308 = dma.done.wait [#allocation3], 64  }
 0x1c3   :  { %309 = vsyncadd [#allocation3], 4294967232 }
 0x1c4   :  { %219 = vsyncpa [#allocation3], 1 }

</bundles_post_ra>
